<compile_context>
chip_gen: v7x
topology: tpu7x:2x2x1
jax: 0.10.0
libtpu: 0.0.40
codegen_flags: <defaults>
</compile_context>

<pallas_src>
import jax
import jax.numpy as jnp
from jax.experimental import pallas as pl
from jax.experimental.pallas import tpu as pltpu


def _round_up(x, m):
    return (x + m - 1) // m * m


# ----------------------------------------------------------------------------
# Pallas kernel: fused FC head (fc1+bn1+relu -> fc2+bn2+relu -> fc3)
# for one (TM, F) row tile of frames.  bf16 MXU inputs, f32 accumulate/tail.
# ----------------------------------------------------------------------------
def _head_kernel(x_ref, w1_ref, b1_ref, w2_ref, b2_ref, w3_ref, b3_ref, o_ref):
    # fc1 + bn1 (folded into w1/b1) + relu
    h = jnp.dot(x_ref[...], w1_ref[...], preferred_element_type=jnp.float32)
    h = jnp.maximum(h + b1_ref[...], 0.0)                        # (TM, H1) f32
    # fc2 + bn2 (folded into w2/b2) + relu
    h = jnp.dot(h.astype(w2_ref.dtype), w2_ref[...],
                preferred_element_type=jnp.float32)
    h = jnp.maximum(h + b2_ref[...], 0.0)                        # (TM, H2) f32
    # dropout(p): identity in eval / deterministic forward;  fc3
    h = jnp.dot(h.astype(w3_ref.dtype), w3_ref[...],
                preferred_element_type=jnp.float32)
    o_ref[...] = (h + b3_ref[...]).astype(o_ref.dtype)           # (TM, E_pad)


def _pick_tm(M):
    """Row-tile size: big tiles amortize the ~0.35us/step overhead and feed
    the MXU; capped so megacore (2 TCs) still gets >= 2 grid steps."""
    if M <= 128:
        return M               # single step; a full-extent block is always legal
    if M >= 1024:
        return 512
    if M >= 512:
        return 256
    return 128


def res_cnn_encoder_head(features, params):
    """Fused FC head of ResCNNEncoder.

    features: (N, T, F) frozen-backbone feature vectors (resnet output, flattened)
    returns : (N, T, E) embeddings  ==  cnn_embed_seq of the PyTorch forward.
    """
    N, T, F = features.shape
    w1, b1 = params["w1"], params["b1"]      # (F, H1) bf16, (1, H1) f32   bn1 folded
    w2, b2 = params["w2"], params["b2"]      # (H1, H2), (1, H2)           bn2 folded
    w3, b3 = params["w3"], params["b3"]      # (H2, E_pad), (1, E_pad)     E lane-padded
    E = params["embed_dim"]
    H1, H2, E_pad = w1.shape[1], w2.shape[1], w3.shape[1]

    M = N * T
    TM = _pick_tm(M)
    # bf16 MXU inputs; NO host-side row padding (ragged last block is masked).
    x = features.reshape(M, F).astype(w1.dtype)

    flops = 2 * M * (F * H1 + H1 * H2 + H2 * E_pad)
    bytes_accessed = (int(x.size) * x.dtype.itemsize
                      + sum(int(p.size) * p.dtype.itemsize
                            for p in (w1, b1, w2, b2, w3, b3))
                      + M * E_pad * 4)

    def call(resident_spec):
        return pl.pallas_call(
            _head_kernel,
            out_shape=jax.ShapeDtypeStruct((M, E_pad), jnp.float32),
            grid=(pl.cdiv(M, TM),),
            in_specs=[
                pl.BlockSpec((TM, F), lambda i: (i, 0)),             # frame row tile
                resident_spec((F, H1)), resident_spec((1, H1)),      # fc1 (+bn1)
                resident_spec((H1, H2)), resident_spec((1, H2)),     # fc2 (+bn2)
                resident_spec((H2, E_pad)), resident_spec((1, E_pad)),  # fc3
            ],
            out_specs=pl.BlockSpec((TM, E_pad), lambda i: (i, 0)),   # lane-dense stores
            compiler_params=pltpu.CompilerParams(
                dimension_semantics=("parallel",)),                  # megacore row sharding
            cost_estimate=pl.CostEstimate(flops=flops, transcendentals=0,
                                          bytes_accessed=bytes_accessed),
        )(x, w1, b1, w2, b2, w3, b3)

    def single_buf(shape):
        # Constant index_map -> fetched once & resident; single-buffering
        # halves the resident-weight VMEM vs. the default double-buffering.
        return pl.BlockSpec(shape, lambda i: (0, 0), pipeline_mode=pl.Buffered(1))

    def double_buf(shape):
        return pl.BlockSpec(shape, lambda i: (0, 0))

    try:
        out = call(single_buf)
    except Exception:
        # Fallback if this jax build rejects pipeline_mode / Buffered(1);
        # resident-weight VMEM simply stays at the default double-buffering.
        out = call(double_buf)

    return out.reshape(N, T, E_pad)[..., :E]


# ----------------------------------------------------------------------------
# Parameter construction (stand-in for the PyTorch module's fc1/bn1/fc2/bn2/fc3)
# and host-side folding of eval-mode BatchNorm into the Linear layers.
# ----------------------------------------------------------------------------
def init_raw_params(key, feat_dim, h1, h2, embed_dim, dtype=jnp.float32):
    ks = jax.random.split(key, 14)

    def linear(kw, kb, fan_in, fan_out):
        lim = 1.0 / jnp.sqrt(jnp.asarray(fan_in, dtype))
        w = jax.random.uniform(kw, (fan_in, fan_out), dtype, -lim, lim)
        b = jax.random.uniform(kb, (fan_out,), dtype, -lim, lim)
        return w, b

    def bn(kg, kb, km, kv, n):
        gamma = 1.0 + 0.1 * jax.random.normal(kg, (n,), dtype)
        beta = 0.1 * jax.random.normal(kb, (n,), dtype)
        mean = 0.1 * jax.random.normal(km, (n,), dtype)
        var = 0.9 + 0.2 * jax.random.uniform(kv, (n,), dtype)   # > 0
        return gamma, beta, mean, var

    fc1_w, fc1_b = linear(ks[0], ks[1], feat_dim, h1)
    g1, be1, m1, v1 = bn(ks[2], ks[3], ks[4], ks[5], h1)
    fc2_w, fc2_b = linear(ks[6], ks[7], h1, h2)
    g2, be2, m2, v2 = bn(ks[8], ks[9], ks[10], ks[11], h2)
    fc3_w, fc3_b = linear(ks[12], ks[13], h2, embed_dim)
    return dict(fc1_w=fc1_w, fc1_b=fc1_b,
                bn1_gamma=g1, bn1_beta=be1, bn1_mean=m1, bn1_var=v1,
                fc2_w=fc2_w, fc2_b=fc2_b,
                bn2_gamma=g2, bn2_beta=be2, bn2_mean=m2, bn2_var=v2,
                fc3_w=fc3_w, fc3_b=fc3_b)


def fold_params(raw, eps=1e-5, mxu_dtype=jnp.bfloat16):
    """Fold eval-mode BatchNorm1d into the preceding Linear (exact, in f32),
    pad the embedding dim to a lane-dense multiple of 128, then cast the
    weight matrices (MXU inputs) to `mxu_dtype`.  Biases stay f32 — they are
    added in the kernel's f32 tail."""
    def fold(w, b, gamma, beta, mean, var):
        scale = gamma / jnp.sqrt(var + eps)
        return w * scale[None, :], (b - mean) * scale + beta

    w1, b1 = fold(raw["fc1_w"], raw["fc1_b"], raw["bn1_gamma"], raw["bn1_beta"],
                  raw["bn1_mean"], raw["bn1_var"])
    w2, b2 = fold(raw["fc2_w"], raw["fc2_b"], raw["bn2_gamma"], raw["bn2_beta"],
                  raw["bn2_mean"], raw["bn2_var"])
    w3, b3 = raw["fc3_w"], raw["fc3_b"]

    E = w3.shape[1]
    E_pad = _round_up(E, 128)                 # real model: 300 -> 384 (unmasked vst)
    if E_pad != E:
        w3 = jnp.pad(w3, ((0, 0), (0, E_pad - E)))
        b3 = jnp.pad(b3, ((0, E_pad - E),))

    return dict(
        w1=w1.astype(mxu_dtype), b1=b1.reshape(1, -1).astype(jnp.float32),
        w2=w2.astype(mxu_dtype), b2=b2.reshape(1, -1).astype(jnp.float32),
        w3=w3.astype(mxu_dtype), b3=b3.reshape(1, -1).astype(jnp.float32),
        embed_dim=E)


# ----------------------------------------------------------------------------
# Pure-JAX f32 reference (unfolded BN, eval statistics) for correctness check.
# ----------------------------------------------------------------------------
def _ref_forward(features, raw, eps=1e-5):
    N, T, F = features.shape
    x = features.reshape(N * T, F)
    h = x @ raw["fc1_w"] + raw["fc1_b"]
    h = (h - raw["bn1_mean"]) / jnp.sqrt(raw["bn1_var"] + eps) \
        * raw["bn1_gamma"] + raw["bn1_beta"]
    h = jnp.maximum(h, 0.0)
    h = h @ raw["fc2_w"] + raw["fc2_b"]
    h = (h - raw["bn2_mean"]) / jnp.sqrt(raw["bn2_var"] + eps) \
        * raw["bn2_gamma"] + raw["bn2_beta"]
    h = jnp.maximum(h, 0.0)
    # dropout: identity (eval)
    h = h @ raw["fc3_w"] + raw["fc3_b"]
    return h.reshape(N, T, -1)


# ----------------------------------------------------------------------------
if __name__ == "__main__":
    import numpy as np

    key = jax.random.PRNGKey(0)
    kf, kp = jax.random.split(key)

    # Small shapes consistent with the module:
    #   batch=2, seq=4, backbone feature dim=256 (stand-in for ResNet-152's 2048),
    #   fc_hidden1=fc_hidden2=128 (stand-in for 512), CNN_embed_dim=72 —
    #   deliberately NOT a multiple of 128 (stand-in for 300) so the lane-pad
    #   (72 -> 128) + slice path of the real head is exercised.
    N, T, F = 2, 4, 256
    H1 = H2 = 128
    E = 72

    # Per-frame frozen-backbone features (the `x.view(N, -1)` tensor).
    # TODO(synk): the actual pretrained ResNet-152 feature extractor is not
    # translated (external weights); these features stand in for its output.
    feats = jax.random.normal(kf, (N, T, F), jnp.float32)

    raw = init_raw_params(kp, F, H1, H2, E)
    params = fold_params(raw)          # BN folded, E lane-padded, bf16 weights

    out = jax.block_until_ready(res_cnn_encoder_head(feats, params))

    ref = _ref_forward(feats, raw)
    assert out.shape == (N, T, E)
    # bf16 MXU inputs vs. pure-f32 reference -> loose tolerance (precision,
    # not a kernel bug; accumulation and the BN-folded tail are f32).
    np.testing.assert_allclose(np.asarray(out), np.asarray(ref),
                               rtol=5e-2, atol=5e-2)

    print("KERNEL_OK")
</pallas_src>

<mosaic_0001>
module attributes {stable_mosaic.version = 11 : i64} {
  func.func @_head_kernel(%arg0: i32, %arg1: memref<8x256xbf16, #tpu.memory_space<vmem>>, %arg2: memref<256x128xbf16, #tpu.memory_space<vmem>>, %arg3: memref<1x128xf32, #tpu.memory_space<vmem>>, %arg4: memref<128x128xbf16, #tpu.memory_space<vmem>>, %arg5: memref<1x128xf32, #tpu.memory_space<vmem>>, %arg6: memref<128x128xbf16, #tpu.memory_space<vmem>>, %arg7: memref<1x128xf32, #tpu.memory_space<vmem>>, %arg8: memref<8x128xf32, #tpu.memory_space<vmem>>) attributes {dimension_semantics = [#tpu.dimension_semantics<parallel>], iteration_bounds = array<i64: 1>, scalar_prefetch = 0 : i64, scratch_operands = 0 : i64, tpu.core_type = #tpu.core_type<tc>, window_params = [{transform_indices = @transform_0, window_bounds = array<i64: 8, 256>}, {pipeline_mode = #tpu.pipeline_mode<synchronous>, transform_indices = @transform_1, window_bounds = array<i64: 256, 128>}, {pipeline_mode = #tpu.pipeline_mode<synchronous>, transform_indices = @transform_2, window_bounds = array<i64: 1, 128>}, {pipeline_mode = #tpu.pipeline_mode<synchronous>, transform_indices = @transform_3, window_bounds = array<i64: 128, 128>}, {pipeline_mode = #tpu.pipeline_mode<synchronous>, transform_indices = @transform_4, window_bounds = array<i64: 1, 128>}, {pipeline_mode = #tpu.pipeline_mode<synchronous>, transform_indices = @transform_5, window_bounds = array<i64: 128, 128>}, {pipeline_mode = #tpu.pipeline_mode<synchronous>, transform_indices = @transform_6, window_bounds = array<i64: 1, 128>}, {transform_indices = @transform_7, window_bounds = array<i64: 8, 128>}]} {
    %c0 = arith.constant 0 : index
    %c0_0 = arith.constant 0 : index
    %0 = vector.load %arg1[%c0, %c0_0] : memref<8x256xbf16, #tpu.memory_space<vmem>>, vector<8x256xbf16>
    %c0_1 = arith.constant 0 : index
    %c0_2 = arith.constant 0 : index
    %1 = vector.load %arg2[%c0_1, %c0_2] : memref<256x128xbf16, #tpu.memory_space<vmem>>, vector<256x128xbf16>
    %cst = arith.constant dense<0.000000e+00> : vector<8x128xf32>
    %2 = tpu.matmul %0, %1, %cst {dimension_numbers = #tpu.dot_dimension_numbers<[1], [0], [0], [1], [0, 0, 1, 1], [], []>} : vector<8x256xbf16>, vector<256x128xbf16>, vector<8x128xf32> -> vector<8x128xf32>
    %c0_3 = arith.constant 0 : index
    %c0_4 = arith.constant 0 : index
    %3 = vector.load %arg3[%c0_3, %c0_4] : memref<1x128xf32, #tpu.memory_space<vmem>>, vector<1x128xf32>
    %4 = vector.broadcast %3 : vector<1x128xf32> to vector<8x128xf32>
    %5 = arith.addf %2, %4 : vector<8x128xf32>
    %cst_5 = arith.constant 0.000000e+00 : f32
    %6 = vector.broadcast %cst_5 : f32 to vector<8x128xf32>
    %7 = arith.maximumf %5, %6 : vector<8x128xf32>
    %8 = arith.truncf %7 : vector<8x128xf32> to vector<8x128xbf16>
    %c0_6 = arith.constant 0 : index
    %c0_7 = arith.constant 0 : index
    %9 = vector.load %arg4[%c0_6, %c0_7] : memref<128x128xbf16, #tpu.memory_space<vmem>>, vector<128x128xbf16>
    %cst_8 = arith.constant dense<0.000000e+00> : vector<8x128xf32>
    %10 = tpu.matmul %8, %9, %cst_8 {dimension_numbers = #tpu.dot_dimension_numbers<[1], [0], [0], [1], [0, 0, 1, 1], [], []>} : vector<8x128xbf16>, vector<128x128xbf16>, vector<8x128xf32> -> vector<8x128xf32>
    %c0_9 = arith.constant 0 : index
    %c0_10 = arith.constant 0 : index
    %11 = vector.load %arg5[%c0_9, %c0_10] : memref<1x128xf32, #tpu.memory_space<vmem>>, vector<1x128xf32>
    %12 = vector.broadcast %11 : vector<1x128xf32> to vector<8x128xf32>
    %13 = arith.addf %10, %12 : vector<8x128xf32>
    %cst_11 = arith.constant 0.000000e+00 : f32
    %14 = vector.broadcast %cst_11 : f32 to vector<8x128xf32>
    %15 = arith.maximumf %13, %14 : vector<8x128xf32>
    %16 = arith.truncf %15 : vector<8x128xf32> to vector<8x128xbf16>
    %c0_12 = arith.constant 0 : index
    %c0_13 = arith.constant 0 : index
    %17 = vector.load %arg6[%c0_12, %c0_13] : memref<128x128xbf16, #tpu.memory_space<vmem>>, vector<128x128xbf16>
    %cst_14 = arith.constant dense<0.000000e+00> : vector<8x128xf32>
    %18 = tpu.matmul %16, %17, %cst_14 {dimension_numbers = #tpu.dot_dimension_numbers<[1], [0], [0], [1], [0, 0, 1, 1], [], []>} : vector<8x128xbf16>, vector<128x128xbf16>, vector<8x128xf32> -> vector<8x128xf32>
    %c0_15 = arith.constant 0 : index
    %c0_16 = arith.constant 0 : index
    %19 = vector.load %arg7[%c0_15, %c0_16] : memref<1x128xf32, #tpu.memory_space<vmem>>, vector<1x128xf32>
    %20 = vector.broadcast %19 : vector<1x128xf32> to vector<8x128xf32>
    %21 = arith.addf %18, %20 : vector<8x128xf32>
    %c0_17 = arith.constant 0 : index
    %c0_18 = arith.constant 0 : index
    %22 = vector.load %arg8[%c0_17, %c0_18] : memref<8x128xf32, #tpu.memory_space<vmem>>, vector<8x128xf32>
    tpu.vector_store %arg8[%c0_17, %c0_18], %21 {strides = array<i32>} : memref<8x128xf32, #tpu.memory_space<vmem>>, vector<8x128xf32>,
    return
  }
  func.func @transform_0(%arg0: i32) -> (i32, i32) {
    %c0_i32 = arith.constant 0 : i32
    %c0_i32_0 = arith.constant 0 : i32
    return %arg0, %c0_i32 : i32, i32
  }
  func.func @transform_1(%arg0: i32) -> (i32, i32) {
    %c0_i32 = arith.constant 0 : i32
    %c0_i32_0 = arith.constant 0 : i32
    %c0_i32_1 = arith.constant 0 : i32
    return %c0_i32, %c0_i32_0 : i32, i32
  }
  func.func @transform_2(%arg0: i32) -> (i32, i32) {
    %c0_i32 = arith.constant 0 : i32
    %c0_i32_0 = arith.constant 0 : i32
    %c0_i32_1 = arith.constant 0 : i32
    return %c0_i32, %c0_i32_0 : i32, i32
  }
  func.func @transform_3(%arg0: i32) -> (i32, i32) {
    %c0_i32 = arith.constant 0 : i32
    %c0_i32_0 = arith.constant 0 : i32
    %c0_i32_1 = arith.constant 0 : i32
    return %c0_i32, %c0_i32_0 : i32, i32
  }
  func.func @transform_4(%arg0: i32) -> (i32, i32) {
    %c0_i32 = arith.constant 0 : i32
    %c0_i32_0 = arith.constant 0 : i32
    %c0_i32_1 = arith.constant 0 : i32
    return %c0_i32, %c0_i32_0 : i32, i32
  }
  func.func @transform_5(%arg0: i32) -> (i32, i32) {
    %c0_i32 = arith.constant 0 : i32
    %c0_i32_0 = arith.constant 0 : i32
    %c0_i32_1 = arith.constant 0 : i32
    return %c0_i32, %c0_i32_0 : i32, i32
  }
  func.func @transform_6(%arg0: i32) -> (i32, i32) {
    %c0_i32 = arith.constant 0 : i32
    %c0_i32_0 = arith.constant 0 : i32
    %c0_i32_1 = arith.constant 0 : i32
    return %c0_i32, %c0_i32_0 : i32, i32
  }
  func.func @transform_7(%arg0: i32) -> (i32, i32) {
    %c0_i32 = arith.constant 0 : i32
    %c0_i32_0 = arith.constant 0 : i32
    return %arg0, %c0_i32 : i32, i32
  }
}

module attributes {stable_mosaic.version = 11 : i64} {
  func.func @_head_kernel(%arg0: i32, %arg1: memref<8x256xbf16, #tpu.memory_space<vmem>>, %arg2: memref<256x128xbf16, #tpu.memory_space<vmem>>, %arg3: memref<1x128xf32, #tpu.memory_space<vmem>>, %arg4: memref<128x128xbf16, #tpu.memory_space<vmem>>, %arg5: memref<1x128xf32, #tpu.memory_space<vmem>>, %arg6: memref<128x128xbf16, #tpu.memory_space<vmem>>, %arg7: memref<1x128xf32, #tpu.memory_space<vmem>>, %arg8: memref<8x128xf32, #tpu.memory_space<vmem>>) attributes {dimension_semantics = [#tpu.dimension_semantics<parallel>], iteration_bounds = array<i64: 1>, scalar_prefetch = 0 : i64, scratch_operands = 0 : i64, tpu.core_type = #tpu.core_type<tc>, window_params = [{transform_indices = @transform_0, window_bounds = array<i64: 8, 256>}, {pipeline_mode = #tpu.pipeline_mode<synchronous>, transform_indices = @transform_1, window_bounds = array<i64: 256, 128>}, {pipeline_mode = #tpu.pipeline_mode<synchronous>, transform_indices = @transform_2, window_bounds = array<i64: 1, 128>}, {pipeline_mode = #tpu.pipeline_mode<synchronous>, transform_indices = @transform_3, window_bounds = array<i64: 128, 128>}, {pipeline_mode = #tpu.pipeline_mode<synchronous>, transform_indices = @transform_4, window_bounds = array<i64: 1, 128>}, {pipeline_mode = #tpu.pipeline_mode<synchronous>, transform_indices = @transform_5, window_bounds = array<i64: 128, 128>}, {pipeline_mode = #tpu.pipeline_mode<synchronous>, transform_indices = @transform_6, window_bounds = array<i64: 1, 128>}, {transform_indices = @transform_7, window_bounds = array<i64: 8, 128>}]} {
    %c0 = arith.constant 0 : index
    %c0_0 = arith.constant 0 : index
    %0 = vector.load %arg1[%c0, %c0_0] : memref<8x256xbf16, #tpu.memory_space<vmem>>, vector<8x256xbf16>
    %c0_1 = arith.constant 0 : index
    %c0_2 = arith.constant 0 : index
    %1 = vector.load %arg2[%c0_1, %c0_2] : memref<256x128xbf16, #tpu.memory_space<vmem>>, vector<256x128xbf16>
    %cst = arith.constant dense<0.000000e+00> : vector<8x128xf32>
    %2 = tpu.matmul %0, %1, %cst {dimension_numbers = #tpu.dot_dimension_numbers<[1], [0], [0], [1], [0, 0, 1, 1], [], []>} : vector<8x256xbf16>, vector<256x128xbf16>, vector<8x128xf32> -> vector<8x128xf32>
    %c0_3 = arith.constant 0 : index
    %c0_4 = arith.constant 0 : index
    %3 = vector.load %arg3[%c0_3, %c0_4] : memref<1x128xf32, #tpu.memory_space<vmem>>, vector<1x128xf32>
    %4 = vector.broadcast %3 : vector<1x128xf32> to vector<8x128xf32>
    %5 = arith.addf %2, %4 : vector<8x128xf32>
    %cst_5 = arith.constant 0.000000e+00 : f32
    %6 = vector.broadcast %cst_5 : f32 to vector<8x128xf32>
    %7 = arith.maximumf %5, %6 : vector<8x128xf32>
    %8 = arith.truncf %7 : vector<8x128xf32> to vector<8x128xbf16>
    %c0_6 = arith.constant 0 : index
    %c0_7 = arith.constant 0 : index
    %9 = vector.load %arg4[%c0_6, %c0_7] : memref<128x128xbf16, #tpu.memory_space<vmem>>, vector<128x128xbf16>
    %cst_8 = arith.constant dense<0.000000e+00> : vector<8x128xf32>
    %10 = tpu.matmul %8, %9, %cst_8 {dimension_numbers = #tpu.dot_dimension_numbers<[1], [0], [0], [1], [0, 0, 1, 1], [], []>} : vector<8x128xbf16>, vector<128x128xbf16>, vector<8x128xf32> -> vector<8x128xf32>
    %c0_9 = arith.constant 0 : index
    %c0_10 = arith.constant 0 : index
    %11 = vector.load %arg5[%c0_9, %c0_10] : memref<1x128xf32, #tpu.memory_space<vmem>>, vector<1x128xf32>
    %12 = vector.broadcast %11 : vector<1x128xf32> to vector<8x128xf32>
    %13 = arith.addf %10, %12 : vector<8x128xf32>
    %cst_11 = arith.constant 0.000000e+00 : f32
    %14 = vector.broadcast %cst_11 : f32 to vector<8x128xf32>
    %15 = arith.maximumf %13, %14 : vector<8x128xf32>
    %16 = arith.truncf %15 : vector<8x128xf32> to vector<8x128xbf16>
    %c0_12 = arith.constant 0 : index
    %c0_13 = arith.constant 0 : index
    %17 = vector.load %arg6[%c0_12, %c0_13] : memref<128x128xbf16, #tpu.memory_space<vmem>>, vector<128x128xbf16>
    %cst_14 = arith.constant dense<0.000000e+00> : vector<8x128xf32>
    %18 = tpu.matmul %16, %17, %cst_14 {dimension_numbers = #tpu.dot_dimension_numbers<[1], [0], [0], [1], [0, 0, 1, 1], [], []>} : vector<8x128xbf16>, vector<128x128xbf16>, vector<8x128xf32> -> vector<8x128xf32>
    %c0_15 = arith.constant 0 : index
    %c0_16 = arith.constant 0 : index
    %19 = vector.load %arg7[%c0_15, %c0_16] : memref<1x128xf32, #tpu.memory_space<vmem>>, vector<1x128xf32>
    %20 = vector.broadcast %19 : vector<1x128xf32> to vector<8x128xf32>
    %21 = arith.addf %18, %20 : vector<8x128xf32>
    %c0_17 = arith.constant 0 : index
    %c0_18 = arith.constant 0 : index
    %22 = vector.load %arg8[%c0_17, %c0_18] : memref<8x128xf32, #tpu.memory_space<vmem>>, vector<8x128xf32>
    tpu.vector_store %arg8[%c0_17, %c0_18], %21 {strides = array<i32>} : memref<8x128xf32, #tpu.memory_space<vmem>>, vector<8x128xf32>,
    return
  }
  func.func @transform_0(%arg0: i32) -> (i32, i32) {
    %c0_i32 = arith.constant 0 : i32
    %c0_i32_0 = arith.constant 0 : i32
    return %arg0, %c0_i32 : i32, i32
  }
  func.func @transform_1(%arg0: i32) -> (i32, i32) {
    %c0_i32 = arith.constant 0 : i32
    %c0_i32_0 = arith.constant 0 : i32
    %c0_i32_1 = arith.constant 0 : i32
    return %c0_i32, %c0_i32_0 : i32, i32
  }
  func.func @transform_2(%arg0: i32) -> (i32, i32) {
    %c0_i32 = arith.constant 0 : i32
    %c0_i32_0 = arith.constant 0 : i32
    %c0_i32_1 = arith.constant 0 : i32
    return %c0_i32, %c0_i32_0 : i32, i32
  }
  func.func @transform_3(%arg0: i32) -> (i32, i32) {
    %c0_i32 = arith.constant 0 : i32
    %c0_i32_0 = arith.constant 0 : i32
    %c0_i32_1 = arith.constant 0 : i32
    return %c0_i32, %c0_i32_0 : i32, i32
  }
  func.func @transform_4(%arg0: i32) -> (i32, i32) {
    %c0_i32 = arith.constant 0 : i32
    %c0_i32_0 = arith.constant 0 : i32
    %c0_i32_1 = arith.constant 0 : i32
    return %c0_i32, %c0_i32_0 : i32, i32
  }
  func.func @transform_5(%arg0: i32) -> (i32, i32) {
    %c0_i32 = arith.constant 0 : i32
    %c0_i32_0 = arith.constant 0 : i32
    %c0_i32_1 = arith.constant 0 : i32
    return %c0_i32, %c0_i32_0 : i32, i32
  }
  func.func @transform_6(%arg0: i32) -> (i32, i32) {
    %c0_i32 = arith.constant 0 : i32
    %c0_i32_0 = arith.constant 0 : i32
    %c0_i32_1 = arith.constant 0 : i32
    return %c0_i32, %c0_i32_0 : i32, i32
  }
  func.func @transform_7(%arg0: i32) -> (i32, i32) {
    %c0_i32 = arith.constant 0 : i32
    %c0_i32_0 = arith.constant 0 : i32
    return %arg0, %c0_i32 : i32, i32
  }
}

</mosaic_0001>

<bundles_post_ra>
// kernel: tpu_custom_call.1
= control target key start
LH: loop header
LB: loop body
LE: loop exit
PB: predicated region body
PF: predicated region fallthrough
CT: control target
= control target key end

     0   :  { %12 = vsyncpa [#allocation3], 0  ;;  %s931_s0 = inlined_call_operand.hbm [shape: bf16[8,256], index: 0, kind: input, shape index: {}]   ;;  %s932_s1 = inlined_call_operand.hbm [shape: bf16[256,128], index: 1, kind: input, shape index: {}]   ;;  %s933_s2 = inlined_call_operand.vmem [shape: f32[1,128], index: 2, kind: input, shape index: {}]   ;;  %s934_s3 = inlined_call_operand.hbm [shape: bf16[128,128], index: 3, kind: input, shape index: {}]   ;;  %s935_s4 = inlined_call_operand.vmem [shape: f32[1,128], index: 4, kind: input, shape index: {}]   ;;  %s936_s5 = inlined_call_operand.hbm [shape: bf16[128,128], index: 5, kind: input, shape index: {}]   ;;  %s937_s6 = inlined_call_operand.vmem [shape: f32[1,128], index: 6, kind: input, shape index: {}]   ;;  %s938_s7 = inlined_call_operand.hbm [shape: f32[8,128], index: 7, kind: output, shape index: {}]  }
   0x1   :  { %13 = vsyncpa [#allocation6], 0 }
   0x2   :  { %14 = vsyncpa [#allocation9], 0 }
   0x3   :  { %15 = vsyncpa [#allocation4], 0  ;;  %s786_s24 = smov [#allocation5]   ;;  %s668_s28 = scalar_lea.hbm %s932_s1, 2048 }
   0x4   :  { %s31_s25 = sshll.u32 %s786_s24, 4  ;;  %p669_p0 = scmp.ne.s32.totalorder %s932_s1, %s668_s28  ;;  %s32_s25 = int_to_ptr.vmem [resolvable:$true] %s31_s25 }
   0x5   :  { %p672_p1 = scmp.lt.u32.totalorder %s668_s28, %s932_s1 }
   0x7   :  { %p674_p2 = pnand %p672_p1, %p669_p0 }
   0x9   :  { %677 = shalt.err (!%p674_p2)
}
   0xa   :  { %s678_s10 = scalar_lea.vmem %s32_s25, 2048  ;;  %p683_p4 = scmp.lt.s32.totalorder %s32_s25, %s32_s25 }
   0xb   :  { %p679_p3 = scmp.ne.s32.totalorder %s32_s25, %s678_s10  ;;  %p684_p5 = scmp.lt.s32.totalorder %s678_s10, %s678_s10 }
   0xd   :  { %p685_p6 = por %p684_p5, %p683_p4 }
   0xf   :  { %p686_p7 = pnand %p685_p6, %p679_p3 }
  0x11   :  { %689 = shalt.err (!%p686_p7)
}
  0x12   :  { %s787_s11 = smov 64   ;;  %s788_s12 = smov 4  }
  0x13   :  { %37 = dma.hbm_to_vmem [thread:$0]  %s932_s1, 2048, %s32_s25, [#allocation6], %s787_s11, %s787_s11, %s788_s12  }
  0x14   :  { %s789_s15 = smov [#allocation2]   ;;  %s790_s17 = smov [#allocation7]  }
  0x15   :  { %s22_s16 = sshll.u32 %s789_s15, 4  ;;  %s45_s18 = sshll.u32 %s790_s17, 4  ;;  %s23_s16 = int_to_ptr.vmem [resolvable:$true] %s22_s16  ;;  %s46_s18 = int_to_ptr.vmem [resolvable:$true] %s45_s18 }
  0x16   :  { %s690_s21 = scalar_lea.hbm %s931_s0, 128 }
  0x17   :  { %p691_p8 = scmp.ne.s32.totalorder %s931_s0, %s690_s21  ;;  %p694_p9 = scmp.lt.u32.totalorder %s690_s21, %s931_s0 }
  0x19   :  { %p696_p10 = pnand %p694_p9, %p691_p8 }
  0x1b   :  { %699 = shalt.err (!%p696_p10)
}
  0x1c   :  { %s700_s1 = scalar_lea.vmem %s23_s16, 128  ;;  %p705_p12 = scmp.lt.s32.totalorder %s23_s16, %s23_s16 }
  0x1d   :  { %p701_p11 = scmp.ne.s32.totalorder %s23_s16, %s700_s1  ;;  %p706_p13 = scmp.lt.s32.totalorder %s700_s1, %s700_s1 }
  0x1f   :  { %p707_p0 = por %p706_p13, %p705_p12 }
  0x21   :  { %p708_p1 = pnand %p707_p0, %p701_p11 }
  0x23   :  { %711 = shalt.err (!%p708_p1)
}
  0x24   :  { %25 = dma.hbm_to_vmem [thread:$0]  %s931_s0, 128, %s23_s16, [#allocation3]  }
  0x25   :  { %s712_s30 = scalar_lea.hbm %s934_s3, 1024 }
  0x26   :  { %p713_p2 = scmp.ne.s32.totalorder %s934_s3, %s712_s30  ;;  %p716_p3 = scmp.lt.u32.totalorder %s712_s30, %s934_s3 }
  0x28   :  { %p718_p4 = pnand %p716_p3, %p713_p2 }
  0x2a   :  { %721 = shalt.err (!%p718_p4)
}
  0x2b   :  { %s722_s14 = scalar_lea.vmem %s46_s18, 1024  ;;  %p727_p6 = scmp.lt.s32.totalorder %s46_s18, %s46_s18 }
  0x2c   :  { %p723_p5 = scmp.ne.s32.totalorder %s46_s18, %s722_s14  ;;  %p728_p7 = scmp.lt.s32.totalorder %s722_s14, %s722_s14 }
  0x2e   :  { %p729_p8 = por %p728_p7, %p727_p6 }
  0x30   :  { %p730_p9 = pnand %p729_p8, %p723_p5 }
  0x32   :  { %733 = shalt.err (!%p730_p9)
}
  0x33   :  { %51 = dma.hbm_to_vmem [thread:$0]  %s934_s3, 1024, %s46_s18, [#allocation6], %s787_s11, %s787_s11, %s788_s12  }
  0x34   :  { %s791_s16 = smov [#allocation8]   ;;  %s734_s21 = scalar_lea.hbm %s936_s5, 1024 }
  0x35   :  { %s59_s17 = sshll.u32 %s791_s16, 4  ;;  %p735_p10 = scmp.ne.s32.totalorder %s936_s5, %s734_s21  ;;  %s60_s17 = int_to_ptr.vmem [resolvable:$true] %s59_s17 }
  0x36   :  { %p738_p11 = scmp.lt.u32.totalorder %s734_s21, %s936_s5 }
  0x38   :  { %p740_p12 = pnand %p738_p11, %p735_p10 }
  0x3a   :  { %743 = shalt.err (!%p740_p12)
}
  0x3b   :  { %s744_s1 = scalar_lea.vmem %s60_s17, 1024  ;;  %p749_p0 = scmp.lt.s32.totalorder %s60_s17, %s60_s17 }
  0x3c   :  { %p745_p13 = scmp.ne.s32.totalorder %s60_s17, %s744_s1  ;;  %p750_p1 = scmp.lt.s32.totalorder %s744_s1, %s744_s1 }
  0x3e   :  { %p751_p2 = por %p750_p1, %p749_p0 }
  0x40   :  { %p752_p3 = pnand %p751_p2, %p745_p13 }
  0x42   :  { %755 = shalt.err (!%p752_p3)
}
  0x43   :  { %65 = dma.hbm_to_vmem [thread:$0]  %s936_s5, 1024, %s60_s17, [#allocation9], %s787_s11, %s787_s11, %s788_s12  }
  0x44   :  { %778 = dma.done.wait [#allocation3], 128  }
  0x45   :  { %779 = vsyncadd [#allocation3], 4294967168 }
  0x46   :  { %780 = dma.done.wait [#allocation6], 3072  }
  0x47   :  { %781 = vsyncadd [#allocation6], 4294964224 }
  0x48   :  { %782 = dma.done.wait [#allocation9], 1024  }
  0x49   :  { %783 = vsyncadd [#allocation9], 4294966272  ;;  %v792_v0 = vmov 0.0   ;;  %v634_v1 = vld [vmem:[#allocation5 + $0x40] sm:$0xff]   ;;  %v636_v3 = vld [vmem:[#allocation5 + $0x48] sm:$0xff]   ;;  %vm793_vm0 = vmmov 0  }
  0x4a   :  { %585 = vmatprep.subr.bf16.mxu1 %v792_v0  ;;  %v635_v2 = vld [vmem:[#allocation5] sm:$0xff]   ;;  %545 = vmatprep.subr.bf16.mxu0 %v634_v1  ;;  %v637_v4 = vld [vmem:[#allocation5 + $0x8] sm:$0xff]   ;;  %v638_v5 = vld [vmem:[#allocation5 + $0x50] sm:$0xff]   ;;  %s794_s28 = smov [#allocation10]  }
  0x4b   :  { %546 = vmatpush3.bf16.msra.mxu0 %v635_v2  ;;  %v639_v6 = vld [vmem:[#allocation5 + $0x10] sm:$0xff]   ;;  %v640_v7 = vld [vmem:[#allocation5 + $0x58] sm:$0xff]   ;;  %v642_v9 = vld [vmem:[#allocation5 + $0x60] sm:$0xff]   ;;  %601 = vmatprep.mubr.msk.bf16.mxu1 %vm793_vm0, %v792_v0  ;;  %s497_s29 = sshll.u32 %s794_s28, 4  ;;  %s498_s29 = int_to_ptr.vmem [resolvable:$true] %s497_s29 }
  0x4c   :  { %547 = vmatprep.subr.bf16.mxu0 %v636_v3  ;;  %v641_v8 = vld [vmem:[#allocation5 + $0x18] sm:$0xff]   ;;  %v643_v10 = vld [vmem:[#allocation5 + $0x20] sm:$0xff]   ;;  %v644_v11 = vld [vmem:[#allocation5 + $0x68] sm:$0xff]   ;;  %p761_p5 = scmp.lt.s32.totalorder %s498_s29, %s498_s29 }
  0x4d   :  { %v81_v12 = vld [vmem:[#allocation2] sm:$0xff]  ;;  %v652_v14 = vld [vmem:[#allocation7] sm:$0xff]   ;;  %v645_v15 = vld [vmem:[#allocation5 + $0x28] sm:$0xff]  }
  0x4e   :  { %v510_v13 = vcombine.high %v81_v12, %v81_v12  ;;  %v646_v16 = vld [vmem:[#allocation5 + $0x70] sm:$0xff]   ;;  %586 = vmatpush3.bf16.msra.mxu1 %v652_v14  ;;  %v653_v17 = vld [vmem:[#allocation7 + $0x8] sm:$0xff]   ;;  %v648_v19 = vld [vmem:[#allocation5 + $0x78] sm:$0xff]   ;;  %v509_v23 = vcombine.low %v81_v12, %v81_v12 }
  0x4f   :  { %548 = vmatpush3.bf16.msra.mxu0 %v637_v4  ;;  %v647_v18 = vld [vmem:[#allocation5 + $0x30] sm:$0xff]   ;;  %587 = vmatprep.subr.bf16.mxu1 %v792_v0  ;;  %v649_v21 = vld [vmem:[#allocation5 + $0x38] sm:$0xff]   ;;  %v656_v24 = vld [vmem:[#allocation7 + $0x20] sm:$0xff]  }
  0x50   :  { %549 = vmatprep.subr.bf16.mxu0 %v638_v5  ;;  %256 = vmatprep.mubr.bf16.mxu0 %v510_v13  ;;  %v654_v20 = vld [vmem:[#allocation7 + $0x10] sm:$0xff]   ;;  %v655_v22 = vld [vmem:[#allocation7 + $0x18] sm:$0xff]   ;;  %v657_v25 = vld [vmem:[#allocation7 + $0x28] sm:$0xff]  }
  0x51   :  { %v658_v26 = vld [vmem:[#allocation7 + $0x30] sm:$0xff]   ;;  %v659_v27 = vld [vmem:[#allocation7 + $0x38] sm:$0xff]   ;;  %v660_v28 = vld [vmem:[#allocation8] sm:$0xff]  }
  0x52   :  { %588 = vmatpush3.bf16.msra.mxu1 %v653_v17  ;;  %v661_v29 = vld [vmem:[#allocation8 + $0x8] sm:$0xff]   ;;  %v662_v30 = vld [vmem:[#allocation8 + $0x10] sm:$0xff]   ;;  %v663_v31 = vld [vmem:[#allocation8 + $0x18] sm:$0xff]  }
  0x53   :  { %550 = vmatpush3.bf16.msra.mxu0 %v639_v6  ;;  %589 = vmatprep.subr.bf16.mxu1 %v792_v0  ;;  %v664_v32 = vld [vmem:[#allocation8 + $0x20] sm:$0xff]   ;;  %v665_v33 = vld [vmem:[#allocation8 + $0x28] sm:$0xff]   ;;  %v508_v35 = vld [vmem:[%s933_s2] ss:$0 sm:$0xff] }
  0x54   :  { %551 = vmatprep.subr.bf16.mxu0 %v640_v7  ;;  %v666_v43 = vld [vmem:[#allocation8 + $0x30] sm:$0xff]   ;;  %v667_v44 = vld [vmem:[#allocation8 + $0x38] sm:$0xff]  }
  0x55   :  { %v527_v45 = vld [vmem:[%s935_s4] ss:$0 sm:$0xff]  ;;  %s756_s4 = scalar_lea.vmem %s498_s29, 128 }
  0x56   :  { %590 = vmatpush3.bf16.msra.mxu1 %v654_v20  ;;  %v536_v53 = vld [vmem:[%s937_s6] ss:$0 sm:$0xff]  ;;  %p757_p4 = scmp.ne.s32.totalorder %s498_s29, %s756_s4  ;;  %p762_p6 = scmp.lt.s32.totalorder %s756_s4, %s756_s4 }
  0x57   :  { %552 = vmatpush3.bf16.msra.mxu0 %v641_v8  ;;  %591 = vmatprep.subr.bf16.mxu1 %v792_v0 }
  0x58   :  { %553 = vmatprep.subr.bf16.mxu0 %v642_v9  ;;  %p763_p7 = por %p762_p6, %p761_p5 }
  0x5a   :  { %592 = vmatpush3.bf16.msra.mxu1 %v655_v22  ;;  %p764_p8 = pnand %p763_p7, %p757_p4 }
  0x5b   :  { %554 = vmatpush3.bf16.msra.mxu0 %v643_v10  ;;  %593 = vmatprep.subr.bf16.mxu1 %v792_v0 }
  0x5c   :  { %555 = vmatprep.subr.bf16.mxu0 %v644_v11 }
  0x5e   :  { %594 = vmatpush3.bf16.msra.mxu1 %v656_v24 }
  0x5f   :  { %556 = vmatpush3.bf16.msra.mxu0 %v645_v15  ;;  %595 = vmatprep.subr.bf16.mxu1 %v792_v0 }
  0x60   :  { %557 = vmatprep.subr.bf16.mxu0 %v646_v16 }
  0x62   :  { %596 = vmatpush3.bf16.msra.mxu1 %v657_v25 }
  0x63   :  { %558 = vmatpush3.bf16.msra.mxu0 %v647_v18  ;;  %597 = vmatprep.subr.bf16.mxu1 %v792_v0 }
  0x64   :  { %559 = vmatprep.subr.bf16.mxu0 %v648_v19 }
  0x66   :  { %598 = vmatpush3.bf16.msra.mxu1 %v658_v26 }
  0x67   :  { %560 = vmatpush3.bf16.msra.mxu0 %v649_v21  ;;  %599 = vmatprep.subr.bf16.mxu1 %v792_v0 }
  0x68   :  { %605 = vmatprep.subr.bf16.mxu0 %v792_v0 }
  0x6a   :  { %257 = vmatmul.mubr.bf16.vlgmr.msra.gmra.mrb[0].mxu0 %v509_v23  ;;  %600 = vmatpush3.bf16.msra.mxu1 %v659_v27 }
  0x6b   :  { %621 = vmatprep.mubr.msk.bf16.mxu0 %vm793_vm0, %v792_v0  ;;  %606 = vmatpush3.bf16.msra.mxu0 %v660_v28 }
  0x6c   :  { %607 = vmatprep.subr.bf16.mxu0 %v792_v0 }
  0x6f   :  { %608 = vmatpush3.bf16.msra.mxu0 %v661_v29 }
  0x70   :  { %609 = vmatprep.subr.bf16.mxu0 %v792_v0 }
  0x73   :  { %610 = vmatpush3.bf16.msra.mxu0 %v662_v30 }
  0x74   :  { %611 = vmatprep.subr.bf16.mxu0 %v792_v0 }
  0x77   :  { %612 = vmatpush3.bf16.msra.mxu0 %v663_v31 }
  0x78   :  { %613 = vmatprep.subr.bf16.mxu0 %v792_v0 }
  0x7b   :  { %614 = vmatpush3.bf16.msra.mxu0 %v664_v32 }
  0x7c   :  { %615 = vmatprep.subr.bf16.mxu0 %v792_v0 }
  0x7f   :  { %616 = vmatpush3.bf16.msra.mxu0 %v665_v33 }
  0x80   :  { %617 = vmatprep.subr.bf16.mxu0 %v792_v0 }
  0x83   :  { %618 = vmatpush3.bf16.msra.mxu0 %v666_v43 }
  0x84   :  { %619 = vmatprep.subr.bf16.mxu0 %v792_v0 }
  0x87   :  { %620 = vmatpush3.bf16.msra.mxu0 %v667_v44 }
 0x13d   :  { %v561_v34 = vpop.f32.mrb[0].mxu0 }
 0x13e   :  { %v562_v36 = vpop.f32.mrb[1].mxu0 }
 0x13f   :  { %v563_v37 = vadd.f32 %v562_v36, %v561_v34  ;;  %v564_v38 = vpop.f32.mrb[2].mxu0 }
 0x140   :  { %v565_v39 = vpop.f32.mrb[3].mxu0 }
 0x141   :  { %v259_v40 = vadd.f32 %v563_v37, %v508_v35 }
 0x143   :  { %v264_v41 = vmax.f32 %v259_v40, 0.0 }
 0x145   :  { %v265_v42 = vpack.c.bf16 %v264_v41, %v264_v41 }
 0x147   :  { %602 = vmatmul.mubr.bf16.vlgmr.msra.gmra.mrb[0].mxu1 %v265_v42 }
 0x21a   :  { %v371_v46 = vpop.f32.mrb[0].mxu1 }
 0x21b   :  { %v372_v47 = vadd.f32 %v527_v45, %v371_v46  ;;  %v603_v48 = vpop.f32.mrb[1].mxu1 }
 0x21c   :  { %v374_v49 = vpop.f32.mrb[2].mxu1 }
 0x21d   :  { %v377_v50 = vmax.f32 %v372_v47, 0.0  ;;  %v604_v51 = vpop.f32.mrb[3].mxu1 }
 0x21f   :  { %v378_v52 = vpack.c.bf16 %v377_v50, %v377_v50 }
 0x221   :  { %622 = vmatmul.mubr.bf16.vlgmr.msra.gmra.mrb[4].mxu0 %v378_v52 }
 0x2f4   :  { %v484_v54 = vpop.f32.mrb[4].mxu0 }
 0x2f5   :  { %v485_v55 = vadd.f32 %v536_v53, %v484_v54  ;;  %v623_v56 = vpop.f32.mrb[5].mxu0 }
 0x2f6   :  { %v487_v57 = vpop.f32.mrb[6].mxu0 }
 0x2f7   :  { %490 = vst [vmem:[#allocation10] sm:$0xff] %v485_v55  ;;  %v624_v58 = vpop.f32.mrb[7].mxu0 }
 0x2f8   :  { %767 = shalt.err (!%p764_p8)
}
 0x2f9   :  { %s768_s6 = scalar_lea.hbm %s938_s7, 128 }
 0x2fa   :  { %p769_p9 = scmp.ne.s32.totalorder %s938_s7, %s768_s6  ;;  %p772_p10 = scmp.lt.u32.totalorder %s768_s6, %s938_s7 }
 0x2fc   :  { %p774_p11 = pnand %p772_p10, %p769_p9 }
 0x2fe   :  { %777 = shalt.err (!%p774_p11)
}
 0x2ff   :  { %500 = dma.vmem_to_hbm [thread:$0]  %s498_s29, 128, %s938_s7, [#allocation4]  }
 0x300   :  { %784 = dma.done.wait [#allocation4], 128  }
 0x301   :  { %785 = vsyncadd [#allocation4], 4294967168 }
 0x302   :  { %504 = vsyncpa [#allocation3], 1 }
 0x303   :  { %505 = vsyncpa [#allocation6], 1 }
 0x304   :  { %506 = vsyncpa [#allocation9], 1 }
 0x305   :  { %507 = vsyncpa [#allocation4], 1 }

// kernel: tpu_custom_call.1
= control target key start
LH: loop header
LB: loop body
LE: loop exit
PB: predicated region body
PF: predicated region fallthrough
CT: control target
= control target key end

     0   :  { %12 = vsyncpa [#allocation3], 0  ;;  %s931_s0 = inlined_call_operand.hbm [shape: bf16[8,256], index: 0, kind: input, shape index: {}]   ;;  %s932_s1 = inlined_call_operand.hbm [shape: bf16[256,128], index: 1, kind: input, shape index: {}]   ;;  %s933_s2 = inlined_call_operand.vmem [shape: f32[1,128], index: 2, kind: input, shape index: {}]   ;;  %s934_s3 = inlined_call_operand.hbm [shape: bf16[128,128], index: 3, kind: input, shape index: {}]   ;;  %s935_s4 = inlined_call_operand.vmem [shape: f32[1,128], index: 4, kind: input, shape index: {}]   ;;  %s936_s5 = inlined_call_operand.hbm [shape: bf16[128,128], index: 5, kind: input, shape index: {}]   ;;  %s937_s6 = inlined_call_operand.vmem [shape: f32[1,128], index: 6, kind: input, shape index: {}]   ;;  %s938_s7 = inlined_call_operand.hbm [shape: f32[8,128], index: 7, kind: output, shape index: {}]  }
   0x1   :  { %13 = vsyncpa [#allocation6], 0 }
   0x2   :  { %14 = vsyncpa [#allocation9], 0 }
   0x3   :  { %15 = vsyncpa [#allocation4], 0  ;;  %s786_s24 = smov [#allocation5]   ;;  %s668_s28 = scalar_lea.hbm %s932_s1, 2048 }
   0x4   :  { %s31_s25 = sshll.u32 %s786_s24, 4  ;;  %p669_p0 = scmp.ne.s32.totalorder %s932_s1, %s668_s28  ;;  %s32_s25 = int_to_ptr.vmem [resolvable:$true] %s31_s25 }
   0x5   :  { %p672_p1 = scmp.lt.u32.totalorder %s668_s28, %s932_s1 }
   0x7   :  { %p674_p2 = pnand %p672_p1, %p669_p0 }
   0x9   :  { %677 = shalt.err (!%p674_p2)
}
   0xa   :  { %s678_s10 = scalar_lea.vmem %s32_s25, 2048  ;;  %p683_p4 = scmp.lt.s32.totalorder %s32_s25, %s32_s25 }
   0xb   :  { %p679_p3 = scmp.ne.s32.totalorder %s32_s25, %s678_s10  ;;  %p684_p5 = scmp.lt.s32.totalorder %s678_s10, %s678_s10 }
   0xd   :  { %p685_p6 = por %p684_p5, %p683_p4 }
   0xf   :  { %p686_p7 = pnand %p685_p6, %p679_p3 }
  0x11   :  { %689 = shalt.err (!%p686_p7)
}
  0x12   :  { %s787_s11 = smov 64   ;;  %s788_s12 = smov 4  }
  0x13   :  { %37 = dma.hbm_to_vmem [thread:$0]  %s932_s1, 2048, %s32_s25, [#allocation6], %s787_s11, %s787_s11, %s788_s12  }
  0x14   :  { %s789_s15 = smov [#allocation2]   ;;  %s790_s17 = smov [#allocation7]  }
  0x15   :  { %s22_s16 = sshll.u32 %s789_s15, 4  ;;  %s45_s18 = sshll.u32 %s790_s17, 4  ;;  %s23_s16 = int_to_ptr.vmem [resolvable:$true] %s22_s16  ;;  %s46_s18 = int_to_ptr.vmem [resolvable:$true] %s45_s18 }
  0x16   :  { %s690_s21 = scalar_lea.hbm %s931_s0, 128 }
  0x17   :  { %p691_p8 = scmp.ne.s32.totalorder %s931_s0, %s690_s21  ;;  %p694_p9 = scmp.lt.u32.totalorder %s690_s21, %s931_s0 }
  0x19   :  { %p696_p10 = pnand %p694_p9, %p691_p8 }
  0x1b   :  { %699 = shalt.err (!%p696_p10)
}
  0x1c   :  { %s700_s1 = scalar_lea.vmem %s23_s16, 128  ;;  %p705_p12 = scmp.lt.s32.totalorder %s23_s16, %s23_s16 }
  0x1d   :  { %p701_p11 = scmp.ne.s32.totalorder %s23_s16, %s700_s1  ;;  %p706_p13 = scmp.lt.s32.totalorder %s700_s1, %s700_s1 }
  0x1f   :  { %p707_p0 = por %p706_p13, %p705_p12 }
  0x21   :  { %p708_p1 = pnand %p707_p0, %p701_p11 }
  0x23   :  { %711 = shalt.err (!%p708_p1)
}
  0x24   :  { %25 = dma.hbm_to_vmem [thread:$0]  %s931_s0, 128, %s23_s16, [#allocation3]  }
  0x25   :  { %s712_s30 = scalar_lea.hbm %s934_s3, 1024 }
  0x26   :  { %p713_p2 = scmp.ne.s32.totalorder %s934_s3, %s712_s30  ;;  %p716_p3 = scmp.lt.u32.totalorder %s712_s30, %s934_s3 }
  0x28   :  { %p718_p4 = pnand %p716_p3, %p713_p2 }
  0x2a   :  { %721 = shalt.err (!%p718_p4)
}
  0x2b   :  { %s722_s14 = scalar_lea.vmem %s46_s18, 1024  ;;  %p727_p6 = scmp.lt.s32.totalorder %s46_s18, %s46_s18 }
  0x2c   :  { %p723_p5 = scmp.ne.s32.totalorder %s46_s18, %s722_s14  ;;  %p728_p7 = scmp.lt.s32.totalorder %s722_s14, %s722_s14 }
  0x2e   :  { %p729_p8 = por %p728_p7, %p727_p6 }
  0x30   :  { %p730_p9 = pnand %p729_p8, %p723_p5 }
  0x32   :  { %733 = shalt.err (!%p730_p9)
}
  0x33   :  { %51 = dma.hbm_to_vmem [thread:$0]  %s934_s3, 1024, %s46_s18, [#allocation6], %s787_s11, %s787_s11, %s788_s12  }
  0x34   :  { %s791_s16 = smov [#allocation8]   ;;  %s734_s21 = scalar_lea.hbm %s936_s5, 1024 }
  0x35   :  { %s59_s17 = sshll.u32 %s791_s16, 4  ;;  %p735_p10 = scmp.ne.s32.totalorder %s936_s5, %s734_s21  ;;  %s60_s17 = int_to_ptr.vmem [resolvable:$true] %s59_s17 }
  0x36   :  { %p738_p11 = scmp.lt.u32.totalorder %s734_s21, %s936_s5 }
  0x38   :  { %p740_p12 = pnand %p738_p11, %p735_p10 }
  0x3a   :  { %743 = shalt.err (!%p740_p12)
}
  0x3b   :  { %s744_s1 = scalar_lea.vmem %s60_s17, 1024  ;;  %p749_p0 = scmp.lt.s32.totalorder %s60_s17, %s60_s17 }
  0x3c   :  { %p745_p13 = scmp.ne.s32.totalorder %s60_s17, %s744_s1  ;;  %p750_p1 = scmp.lt.s32.totalorder %s744_s1, %s744_s1 }
  0x3e   :  { %p751_p2 = por %p750_p1, %p749_p0 }
  0x40   :  { %p752_p3 = pnand %p751_p2, %p745_p13 }
  0x42   :  { %755 = shalt.err (!%p752_p3)
}
  0x43   :  { %65 = dma.hbm_to_vmem [thread:$0]  %s936_s5, 1024, %s60_s17, [#allocation9], %s787_s11, %s787_s11, %s788_s12  }
  0x44   :  { %778 = dma.done.wait [#allocation3], 128  }
  0x45   :  { %779 = vsyncadd [#allocation3], 4294967168 }
  0x46   :  { %780 = dma.done.wait [#allocation6], 3072  }
  0x47   :  { %781 = vsyncadd [#allocation6], 4294964224 }
  0x48   :  { %782 = dma.done.wait [#allocation9], 1024  }
  0x49   :  { %783 = vsyncadd [#allocation9], 4294966272  ;;  %v792_v0 = vmov 0.0   ;;  %v634_v1 = vld [vmem:[#allocation5 + $0x40] sm:$0xff]   ;;  %v636_v3 = vld [vmem:[#allocation5 + $0x48] sm:$0xff]   ;;  %vm793_vm0 = vmmov 0  }
  0x4a   :  { %585 = vmatprep.subr.bf16.mxu1 %v792_v0  ;;  %v635_v2 = vld [vmem:[#allocation5] sm:$0xff]   ;;  %545 = vmatprep.subr.bf16.mxu0 %v634_v1  ;;  %v637_v4 = vld [vmem:[#allocation5 + $0x8] sm:$0xff]   ;;  %v638_v5 = vld [vmem:[#allocation5 + $0x50] sm:$0xff]   ;;  %s794_s28 = smov [#allocation10]  }
  0x4b   :  { %546 = vmatpush3.bf16.msra.mxu0 %v635_v2  ;;  %v639_v6 = vld [vmem:[#allocation5 + $0x10] sm:$0xff]   ;;  %v640_v7 = vld [vmem:[#allocation5 + $0x58] sm:$0xff]   ;;  %v642_v9 = vld [vmem:[#allocation5 + $0x60] sm:$0xff]   ;;  %601 = vmatprep.mubr.msk.bf16.mxu1 %vm793_vm0, %v792_v0  ;;  %s497_s29 = sshll.u32 %s794_s28, 4  ;;  %s498_s29 = int_to_ptr.vmem [resolvable:$true] %s497_s29 }
  0x4c   :  { %547 = vmatprep.subr.bf16.mxu0 %v636_v3  ;;  %v641_v8 = vld [vmem:[#allocation5 + $0x18] sm:$0xff]   ;;  %v643_v10 = vld [vmem:[#allocation5 + $0x20] sm:$0xff]   ;;  %v644_v11 = vld [vmem:[#allocation5 + $0x68] sm:$0xff]   ;;  %p761_p5 = scmp.lt.s32.totalorder %s498_s29, %s498_s29 }
  0x4d   :  { %v81_v12 = vld [vmem:[#allocation2] sm:$0xff]  ;;  %v652_v14 = vld [vmem:[#allocation7] sm:$0xff]   ;;  %v645_v15 = vld [vmem:[#allocation5 + $0x28] sm:$0xff]  }
  0x4e   :  { %v510_v13 = vcombine.high %v81_v12, %v81_v12  ;;  %v646_v16 = vld [vmem:[#allocation5 + $0x70] sm:$0xff]   ;;  %586 = vmatpush3.bf16.msra.mxu1 %v652_v14  ;;  %v653_v17 = vld [vmem:[#allocation7 + $0x8] sm:$0xff]   ;;  %v648_v19 = vld [vmem:[#allocation5 + $0x78] sm:$0xff]   ;;  %v509_v23 = vcombine.low %v81_v12, %v81_v12 }
  0x4f   :  { %548 = vmatpush3.bf16.msra.mxu0 %v637_v4  ;;  %v647_v18 = vld [vmem:[#allocation5 + $0x30] sm:$0xff]   ;;  %587 = vmatprep.subr.bf16.mxu1 %v792_v0  ;;  %v649_v21 = vld [vmem:[#allocation5 + $0x38] sm:$0xff]   ;;  %v656_v24 = vld [vmem:[#allocation7 + $0x20] sm:$0xff]  }
  0x50   :  { %549 = vmatprep.subr.bf16.mxu0 %v638_v5  ;;  %256 = vmatprep.mubr.bf16.mxu0 %v510_v13  ;;  %v654_v20 = vld [vmem:[#allocation7 + $0x10] sm:$0xff]   ;;  %v655_v22 = vld [vmem:[#allocation7 + $0x18] sm:$0xff]   ;;  %v657_v25 = vld [vmem:[#allocation7 + $0x28] sm:$0xff]  }
  0x51   :  { %v658_v26 = vld [vmem:[#allocation7 + $0x30] sm:$0xff]   ;;  %v659_v27 = vld [vmem:[#allocation7 + $0x38] sm:$0xff]   ;;  %v660_v28 = vld [vmem:[#allocation8] sm:$0xff]  }
  0x52   :  { %588 = vmatpush3.bf16.msra.mxu1 %v653_v17  ;;  %v661_v29 = vld [vmem:[#allocation8 + $0x8] sm:$0xff]   ;;  %v662_v30 = vld [vmem:[#allocation8 + $0x10] sm:$0xff]   ;;  %v663_v31 = vld [vmem:[#allocation8 + $0x18] sm:$0xff]  }
  0x53   :  { %550 = vmatpush3.bf16.msra.mxu0 %v639_v6  ;;  %589 = vmatprep.subr.bf16.mxu1 %v792_v0  ;;  %v664_v32 = vld [vmem:[#allocation8 + $0x20] sm:$0xff]   ;;  %v665_v33 = vld [vmem:[#allocation8 + $0x28] sm:$0xff]   ;;  %v508_v35 = vld [vmem:[%s933_s2] ss:$0 sm:$0xff] }
  0x54   :  { %551 = vmatprep.subr.bf16.mxu0 %v640_v7  ;;  %v666_v43 = vld [vmem:[#allocation8 + $0x30] sm:$0xff]   ;;  %v667_v44 = vld [vmem:[#allocation8 + $0x38] sm:$0xff]  }
  0x55   :  { %v527_v45 = vld [vmem:[%s935_s4] ss:$0 sm:$0xff]  ;;  %s756_s4 = scalar_lea.vmem %s498_s29, 128 }
  0x56   :  { %590 = vmatpush3.bf16.msra.mxu1 %v654_v20  ;;  %v536_v53 = vld [vmem:[%s937_s6] ss:$0 sm:$0xff]  ;;  %p757_p4 = scmp.ne.s32.totalorder %s498_s29, %s756_s4  ;;  %p762_p6 = scmp.lt.s32.totalorder %s756_s4, %s756_s4 }
  0x57   :  { %552 = vmatpush3.bf16.msra.mxu0 %v641_v8  ;;  %591 = vmatprep.subr.bf16.mxu1 %v792_v0 }
  0x58   :  { %553 = vmatprep.subr.bf16.mxu0 %v642_v9  ;;  %p763_p7 = por %p762_p6, %p761_p5 }
  0x5a   :  { %592 = vmatpush3.bf16.msra.mxu1 %v655_v22  ;;  %p764_p8 = pnand %p763_p7, %p757_p4 }
  0x5b   :  { %554 = vmatpush3.bf16.msra.mxu0 %v643_v10  ;;  %593 = vmatprep.subr.bf16.mxu1 %v792_v0 }
  0x5c   :  { %555 = vmatprep.subr.bf16.mxu0 %v644_v11 }
  0x5e   :  { %594 = vmatpush3.bf16.msra.mxu1 %v656_v24 }
  0x5f   :  { %556 = vmatpush3.bf16.msra.mxu0 %v645_v15  ;;  %595 = vmatprep.subr.bf16.mxu1 %v792_v0 }
  0x60   :  { %557 = vmatprep.subr.bf16.mxu0 %v646_v16 }
  0x62   :  { %596 = vmatpush3.bf16.msra.mxu1 %v657_v25 }
  0x63   :  { %558 = vmatpush3.bf16.msra.mxu0 %v647_v18  ;;  %597 = vmatprep.subr.bf16.mxu1 %v792_v0 }
  0x64   :  { %559 = vmatprep.subr.bf16.mxu0 %v648_v19 }
  0x66   :  { %598 = vmatpush3.bf16.msra.mxu1 %v658_v26 }
  0x67   :  { %560 = vmatpush3.bf16.msra.mxu0 %v649_v21  ;;  %599 = vmatprep.subr.bf16.mxu1 %v792_v0 }
  0x68   :  { %605 = vmatprep.subr.bf16.mxu0 %v792_v0 }
  0x6a   :  { %257 = vmatmul.mubr.bf16.vlgmr.msra.gmra.mrb[0].mxu0 %v509_v23  ;;  %600 = vmatpush3.bf16.msra.mxu1 %v659_v27 }
  0x6b   :  { %621 = vmatprep.mubr.msk.bf16.mxu0 %vm793_vm0, %v792_v0  ;;  %606 = vmatpush3.bf16.msra.mxu0 %v660_v28 }
  0x6c   :  { %607 = vmatprep.subr.bf16.mxu0 %v792_v0 }
  0x6f   :  { %608 = vmatpush3.bf16.msra.mxu0 %v661_v29 }
  0x70   :  { %609 = vmatprep.subr.bf16.mxu0 %v792_v0 }
  0x73   :  { %610 = vmatpush3.bf16.msra.mxu0 %v662_v30 }
  0x74   :  { %611 = vmatprep.subr.bf16.mxu0 %v792_v0 }
  0x77   :  { %612 = vmatpush3.bf16.msra.mxu0 %v663_v31 }
  0x78   :  { %613 = vmatprep.subr.bf16.mxu0 %v792_v0 }
  0x7b   :  { %614 = vmatpush3.bf16.msra.mxu0 %v664_v32 }
  0x7c   :  { %615 = vmatprep.subr.bf16.mxu0 %v792_v0 }
  0x7f   :  { %616 = vmatpush3.bf16.msra.mxu0 %v665_v33 }
  0x80   :  { %617 = vmatprep.subr.bf16.mxu0 %v792_v0 }
  0x83   :  { %618 = vmatpush3.bf16.msra.mxu0 %v666_v43 }
  0x84   :  { %619 = vmatprep.subr.bf16.mxu0 %v792_v0 }
  0x87   :  { %620 = vmatpush3.bf16.msra.mxu0 %v667_v44 }
 0x13d   :  { %v561_v34 = vpop.f32.mrb[0].mxu0 }
 0x13e   :  { %v562_v36 = vpop.f32.mrb[1].mxu0 }
 0x13f   :  { %v563_v37 = vadd.f32 %v562_v36, %v561_v34  ;;  %v564_v38 = vpop.f32.mrb[2].mxu0 }
 0x140   :  { %v565_v39 = vpop.f32.mrb[3].mxu0 }
 0x141   :  { %v259_v40 = vadd.f32 %v563_v37, %v508_v35 }
 0x143   :  { %v264_v41 = vmax.f32 %v259_v40, 0.0 }
 0x145   :  { %v265_v42 = vpack.c.bf16 %v264_v41, %v264_v41 }
 0x147   :  { %602 = vmatmul.mubr.bf16.vlgmr.msra.gmra.mrb[0].mxu1 %v265_v42 }
 0x21a   :  { %v371_v46 = vpop.f32.mrb[0].mxu1 }
 0x21b   :  { %v372_v47 = vadd.f32 %v527_v45, %v371_v46  ;;  %v603_v48 = vpop.f32.mrb[1].mxu1 }
 0x21c   :  { %v374_v49 = vpop.f32.mrb[2].mxu1 }
 0x21d   :  { %v377_v50 = vmax.f32 %v372_v47, 0.0  ;;  %v604_v51 = vpop.f32.mrb[3].mxu1 }
 0x21f   :  { %v378_v52 = vpack.c.bf16 %v377_v50, %v377_v50 }
 0x221   :  { %622 = vmatmul.mubr.bf16.vlgmr.msra.gmra.mrb[4].mxu0 %v378_v52 }
 0x2f4   :  { %v484_v54 = vpop.f32.mrb[4].mxu0 }
 0x2f5   :  { %v485_v55 = vadd.f32 %v536_v53, %v484_v54  ;;  %v623_v56 = vpop.f32.mrb[5].mxu0 }
 0x2f6   :  { %v487_v57 = vpop.f32.mrb[6].mxu0 }
 0x2f7   :  { %490 = vst [vmem:[#allocation10] sm:$0xff] %v485_v55  ;;  %v624_v58 = vpop.f32.mrb[7].mxu0 }
 0x2f8   :  { %767 = shalt.err (!%p764_p8)
}
 0x2f9   :  { %s768_s6 = scalar_lea.hbm %s938_s7, 128 }
 0x2fa   :  { %p769_p9 = scmp.ne.s32.totalorder %s938_s7, %s768_s6  ;;  %p772_p10 = scmp.lt.u32.totalorder %s768_s6, %s938_s7 }
 0x2fc   :  { %p774_p11 = pnand %p772_p10, %p769_p9 }
 0x2fe   :  { %777 = shalt.err (!%p774_p11)
}
 0x2ff   :  { %500 = dma.vmem_to_hbm [thread:$0]  %s498_s29, 128, %s938_s7, [#allocation4]  }
 0x300   :  { %784 = dma.done.wait [#allocation4], 128  }
 0x301   :  { %785 = vsyncadd [#allocation4], 4294967168 }
 0x302   :  { %504 = vsyncpa [#allocation3], 1 }
 0x303   :  { %505 = vsyncpa [#allocation6], 1 }
 0x304   :  { %506 = vsyncpa [#allocation9], 1 }
 0x305   :  { %507 = vsyncpa [#allocation4], 1 }

</bundles_post_ra>
